<compile_context>
chip_gen: v6e
topology: v6e:2x2x1
jax: 0.10.0
libtpu: 0.0.40
codegen_flags: <defaults>
</compile_context>

<pallas_src>
import jax
import jax.numpy as jnp
from jax.experimental import pallas as pl
from jax.experimental.pallas import tpu as pltpu


def conclude_kernel(w_ref, b_ref, flow_ref, out_ref):
    # w_ref: (3,) SMEM   b_ref: (1,) SMEM
    # flow_ref: (3, TB) VMEM   out_ref: (2, TB) VMEM
    x = flow_ref[...].astype(jnp.float32)                      # (3, TB)
    w0 = w_ref[0]
    w1 = w_ref[1]
    w2 = w_ref[2]
    b = b_ref[0]

    # Linear layer as three VPU FMAs over lane-dense rows (C=3 contraction).
    z = w0 * x[0:1, :] + w1 * x[1:2, :] + w2 * x[2:3, :] + b   # (1, TB)

    # Row 0: 1 - sigmoid(z) == sigmoid(-z)  (no cancellation for large z)
    out_ref[0:1, :] = (1.0 / (1.0 + jnp.exp(z))).astype(out_ref.dtype)
    # Row 1: sigmoid(z)
    out_ref[1:2, :] = (1.0 / (1.0 + jnp.exp(-z))).astype(out_ref.dtype)


def conclude_forward(flow, weight, bias, *, tb=512):
    """flow: (B, C=3), weight: (1, 3), bias: (1, 1) -> (B, 2) float32."""
    B, C = flow.shape

    # Lane-dense layout: batch on the 128-wide lane axis.
    flow_t = jnp.asarray(flow, jnp.float32).T                  # (C, B)

    # Pad B up to a multiple of the lane tile so every block is full.
    n_tiles = pl.cdiv(B, tb)
    b_pad = n_tiles * tb
    if b_pad != B:
        flow_t = jnp.pad(flow_t, ((0, 0), (0, b_pad - B)))

    w = jnp.asarray(weight, jnp.float32).reshape(C)            # (3,)  -> SMEM
    bvec = jnp.asarray(bias, jnp.float32).reshape(-1)[:1]      # (1,)  -> SMEM

    out_t = pl.pallas_call(
        conclude_kernel,
        out_shape=jax.ShapeDtypeStruct((2, b_pad), jnp.float32),
        grid=(n_tiles,),
        in_specs=[
            pl.BlockSpec(memory_space=pltpu.SMEM),             # weight scalars
            pl.BlockSpec(memory_space=pltpu.SMEM),             # bias scalar
            pl.BlockSpec((C, tb), lambda i: (0, i)),           # flow tile (3, TB)
        ],
        out_specs=pl.BlockSpec((2, tb), lambda i: (0, i)),     # out tile (2, TB)
        compiler_params=pltpu.CompilerParams(
            dimension_semantics=("parallel",),
        ),
    )(w, bvec, flow_t)

    # Back to the PyTorch (B, 2) convention; drop lane padding.
    return out_t[:, :B].T


if __name__ == "__main__":
    # Deterministic parameter init exactly as in the module's __init__.
    weight = jnp.array([[0.333333, 0.333333, 0.333333]], dtype=jnp.float32)  # (1, 3)
    bias = jnp.array([[0.0]], dtype=jnp.float32)                             # (1, 1)

    # Example input: batch of 8 "flows", each with 3 classifier scores.
    key = jax.random.PRNGKey(0)
    flow = jax.random.normal(key, (8, 3), dtype=jnp.float32)

    out = conclude_forward(flow, weight, bias)
    out = jax.block_until_ready(out)

    # Reference check in plain JAX (same math as the PyTorch module).
    z_ref = flow @ weight.T + bias[0, 0]
    p_ref = jax.nn.sigmoid(z_ref)
    ref = jnp.concatenate([1.0 - p_ref, p_ref], axis=1)
    assert out.shape == (8, 2)
    assert jnp.allclose(out, ref, atol=1e-6, rtol=1e-6)

    print("KERNEL_OK")
</pallas_src>

<mosaic_0001>
module attributes {stable_mosaic.version = 11 : i64} {
  func.func @conclude_kernel(%arg0: i32, %arg1: memref<3xf32, #tpu.memory_space<smem>>, %arg2: memref<1xf32, #tpu.memory_space<smem>>, %arg3: memref<3x512xf32, #tpu.memory_space<vmem>>, %arg4: memref<2x512xf32, #tpu.memory_space<vmem>>) attributes {dimension_semantics = [#tpu.dimension_semantics<parallel>], iteration_bounds = array<i64: 1>, scalar_prefetch = 0 : i64, scratch_operands = 0 : i64, tpu.core_type = #tpu.core_type<tc>, window_params = [{transform_indices = @transform_0, window_bounds = array<i64: 3>}, {transform_indices = @transform_1, window_bounds = array<i64: 1>}, {transform_indices = @transform_2, window_bounds = array<i64: 3, 512>}, {transform_indices = @transform_3, window_bounds = array<i64: 2, 512>}]} {
    %c0 = arith.constant 0 : index
    %c0_0 = arith.constant 0 : index
    %0 = vector.load %arg3[%c0, %c0_0] : memref<3x512xf32, #tpu.memory_space<vmem>>, vector<3x512xf32>
    %c0_1 = arith.constant 0 : index
    %1 = memref.load %arg1[%c0_1] : memref<3xf32, #tpu.memory_space<smem>>
    %c1 = arith.constant 1 : index
    %2 = memref.load %arg1[%c1] : memref<3xf32, #tpu.memory_space<smem>>
    %c2 = arith.constant 2 : index
    %3 = memref.load %arg1[%c2] : memref<3xf32, #tpu.memory_space<smem>>
    %c0_2 = arith.constant 0 : index
    %4 = memref.load %arg2[%c0_2] : memref<1xf32, #tpu.memory_space<smem>>
    %5 = vector.extract_strided_slice %0 {offsets = [0, 0], sizes = [1, 512], strides = [1, 1]} : vector<3x512xf32> to vector<1x512xf32>
    %6 = vector.broadcast %1 : f32 to vector<1x512xf32>
    %7 = arith.mulf %6, %5 : vector<1x512xf32>
    %8 = vector.extract_strided_slice %0 {offsets = [1, 0], sizes = [1, 512], strides = [1, 1]} : vector<3x512xf32> to vector<1x512xf32>
    %9 = vector.broadcast %2 : f32 to vector<1x512xf32>
    %10 = arith.mulf %9, %8 : vector<1x512xf32>
    %11 = arith.addf %7, %10 : vector<1x512xf32>
    %12 = vector.extract_strided_slice %0 {offsets = [2, 0], sizes = [1, 512], strides = [1, 1]} : vector<3x512xf32> to vector<1x512xf32>
    %13 = vector.broadcast %3 : f32 to vector<1x512xf32>
    %14 = arith.mulf %13, %12 : vector<1x512xf32>
    %15 = arith.addf %11, %14 : vector<1x512xf32>
    %16 = vector.broadcast %4 : f32 to vector<1x512xf32>
    %17 = arith.addf %15, %16 : vector<1x512xf32>
    %18 = math.exp %17 : vector<1x512xf32>
    %cst = arith.constant 1.000000e+00 : f32
    %19 = vector.broadcast %cst : f32 to vector<1x512xf32>
    %20 = arith.addf %19, %18 : vector<1x512xf32>
    %cst_3 = arith.constant 1.000000e+00 : f32
    %21 = vector.broadcast %cst_3 : f32 to vector<1x512xf32>
    %22 = arith.divf %21, %20 : vector<1x512xf32>
    %c0_4 = arith.constant 0 : index
    %c0_5 = arith.constant 0 : index
    %23 = vector.load %arg4[%c0_4, %c0_5] : memref<2x512xf32, #tpu.memory_space<vmem>>, vector<1x512xf32>
    tpu.vector_store %arg4[%c0_4, %c0_5], %22 {strides = array<i32>} : memref<2x512xf32, #tpu.memory_space<vmem>>, vector<1x512xf32>,
    %cst_6 = arith.constant 0.000000e+00 : f32
    %24 = vector.broadcast %cst_6 : f32 to vector<1x512xf32>
    %25 = arith.subf %24, %17 : vector<1x512xf32>
    %26 = math.exp %25 : vector<1x512xf32>
    %cst_7 = arith.constant 1.000000e+00 : f32
    %27 = vector.broadcast %cst_7 : f32 to vector<1x512xf32>
    %28 = arith.addf %27, %26 : vector<1x512xf32>
    %cst_8 = arith.constant 1.000000e+00 : f32
    %29 = vector.broadcast %cst_8 : f32 to vector<1x512xf32>
    %30 = arith.divf %29, %28 : vector<1x512xf32>
    %c1_9 = arith.constant 1 : index
    %c0_10 = arith.constant 0 : index
    %31 = vector.load %arg4[%c1_9, %c0_10] : memref<2x512xf32, #tpu.memory_space<vmem>>, vector<1x512xf32>
    tpu.vector_store %arg4[%c1_9, %c0_10], %30 {strides = array<i32>} : memref<2x512xf32, #tpu.memory_space<vmem>>, vector<1x512xf32>,
    return
  }
  func.func @transform_0(%arg0: i32) -> i32 {
    %c0_i32 = arith.constant 0 : i32
    %c0_i32_0 = arith.constant 0 : i32
    return %c0_i32 : i32
  }
  func.func @transform_1(%arg0: i32) -> i32 {
    %c0_i32 = arith.constant 0 : i32
    %c0_i32_0 = arith.constant 0 : i32
    return %c0_i32 : i32
  }
  func.func @transform_2(%arg0: i32) -> (i32, i32) {
    %c0_i32 = arith.constant 0 : i32
    %c0_i32_0 = arith.constant 0 : i32
    return %c0_i32, %arg0 : i32, i32
  }
  func.func @transform_3(%arg0: i32) -> (i32, i32) {
    %c0_i32 = arith.constant 0 : i32
    %c0_i32_0 = arith.constant 0 : i32
    return %c0_i32, %arg0 : i32, i32
  }
}

</mosaic_0001>

<bundles_post_ra>
// kernel: tpu_custom_call.1
= control target key start
LH: loop header
LB: loop body
LE: loop exit
PB: predicated region body
PF: predicated region fallthrough
CT: control target
= control target key end

     0   :  { %9 = vsyncpa [#allocation6], 0  ;;  %s294_s0 = inlined_call_operand.vmem [shape: f32[3], index: 0, kind: input, shape index: {}]   ;;  %s295_s1 = inlined_call_operand.<no memory space> [shape: f32[1], index: 1, kind: input, shape index: {}]   ;;  %s296_s2 = inlined_call_operand.hbm [shape: f32[3,512], index: 2, kind: input, shape index: {}]   ;;  %s297_s3 = inlined_call_operand.hbm [shape: f32[2,512], index: 3, kind: output, shape index: {}]  }
   0x1   :  { %10 = vsyncpa [#allocation4], 0 }
   0x2   :  { %11 = vsyncpa [#allocation5], 0  ;;  %s18_s14 = sshll.u32 %s294_s0, 4  ;;  %s19_s14 = int_to_ptr.vmem [resolvable:$true] %s18_s14 }
   0x3   :  { %s200_s15 = scalar_lea.vmem %s19_s14, 16  ;;  %p205_p1 = scmp.lt.s32.totalorder %s19_s14, %s19_s14 }
   0x4   :  { %p201_p0 = scmp.ne.s32.totalorder %s19_s14, %s200_s15  ;;  %p206_p2 = scmp.lt.s32.totalorder %s200_s15, %s200_s15 }
   0x6   :  { %p207_p3 = por %p206_p2, %p205_p1 }
   0x8   :  { %p208_p4 = pnand %p207_p3, %p201_p0 }
   0xa   :  { %211 = shalt.err (!%p208_p4)
}
   0xb   :  { %s258_s16 = smov [#allocation3]   ;;  %s259_s17 = smov [#allocation7]  }
   0xc   :  { %21 = dma.vmem_to_smem %s19_s14, 16, %s258_s16, [#allocation6]  }
   0xd   :  { %s30_s18 = sshll.u32 %s259_s17, 4  ;;  %s31_s18 = int_to_ptr.vmem [resolvable:$true] %s30_s18 }
   0xe   :  { %s220_s19 = scalar_lea.vmem %s31_s18, 256  ;;  %p225_p6 = scmp.lt.s32.totalorder %s31_s18, %s31_s18 }
   0xf   :  { %p221_p5 = scmp.ne.s32.totalorder %s31_s18, %s220_s19  ;;  %p226_p7 = scmp.lt.s32.totalorder %s220_s19, %s220_s19 }
  0x11   :  { %p227_p8 = por %p226_p7, %p225_p6 }
  0x13   :  { %p228_p9 = pnand %p227_p8, %p221_p5 }
  0x15   :  { %231 = shalt.err (!%p228_p9)
}
  0x16   :  { %33 = dma.hbm_to_vmem [thread:$0]  %s296_s2, 256, %s31_s18, [#allocation4]  }
  0x17   :  { %252 = dma.done.wait [#allocation6], 16  }
  0x18   :  { %253 = vsyncadd [#allocation6], 4294967280 }
  0x19   :  { %254 = dma.done.wait [#allocation4], 256  }
  0x1a   :  { %255 = vsyncadd [#allocation4], 4294967040 }
  0x1b   :  { %40 = sfence }
  0x1c   :  { %s43_s21 = sld [smem:[#allocation3]]  ;;  %v41_v0 = vld [vmem:[#allocation7] sm:$0x77]  ;;  %v42_v1 = vld [vmem:[#allocation7 + $0x8] sm:$0x77]  ;;  %v76_v17 = vstv %s295_s1  ;;  %v94_v38 = vlaneseq  ;;  %s261_s1 = smov [#allocation8]  }
  0x1d   :  { %s174_s22 = sld [smem:[#allocation3 + $0x1]]  ;;  %v260_v36 = vmov 1966171168   ;;  %s164_s25 = sshll.u32 %s261_s1, 4  ;;  %s165_s25 = int_to_ptr.vmem [resolvable:$true] %s164_s25 }
  0x1e   :  { %s175_s23 = sld [smem:[#allocation3 + $0x2]]  ;;  %v92_v37 = vunpack.c.l.s4 %v260_v36  ;;  %v95_v40 = vshrl.u32 %v94_v38, 7  ;;  %vm116_vm0 = vcmp.lt.s32.totalorder %v94_v38, 512  ;;  %s232_s26 = scalar_lea.vmem %s165_s25, 128 }
  0x1f   :  { %p233_p10 = scmp.ne.s32.totalorder %s165_s25, %s232_s26  ;;  %p237_p11 = scmp.lt.s32.totalorder %s165_s25, %s165_s25 }
  0x20   :  { %v93_v39 = vunpack.c.0.s8 %v92_v37  ;;  %p238_p12 = scmp.lt.s32.totalorder %s232_s26, %s232_s26 }
  0x22   :  { %v47_v2 = vstv %s43_s21  ;;  %v96_v41 = vsub.s32 %v93_v39, %v95_v40  ;;  %p239_p13 = por %p238_p12, %p237_p11 }
  0x23   :  { %v48_v3 = vmul.f32 %v47_v2, %v41_v0  ;;  %v50_v4 = vstv %s174_s22  ;;  %v49_v5 = vmul.f32 %v47_v2, %v42_v1 }
  0x24   :  { %v51_v6 = vmul.f32 %v50_v4, %v41_v0  ;;  %v52_v7 = vmul.f32 %v50_v4, %v42_v1  ;;  %v63_v8 = vstv %s175_s23  ;;  %p240_p0 = pnand %p239_p13, %p233_p10 }
  0x25   :  { %v64_v9 = vmul.f32 %v63_v8, %v41_v0  ;;  %v65_v10 = vmul.f32 %v63_v8, %v42_v1 }
  0x26   :  { %v176_v11 = vrot.slane %v51_v6, 9  ;;  %v177_v12 = vrot.slane %v52_v7, 9 }
  0x27   :  { %v178_v13 = vrot.slane %v64_v9, 10  ;;  %v179_v14 = vrot.slane %v65_v10, 10 }
  0x28   :  { %v61_v15 = vadd.f32 %v176_v11, %v48_v3  ;;  %v62_v16 = vadd.f32 %v177_v12, %v49_v5 }
  0x2a   :  { %v74_v18 = vadd.f32 %v178_v13, %v61_v15  ;;  %v75_v19 = vadd.f32 %v179_v14, %v62_v16 }
  0x2c   :  { %v77_v20 = vadd.f32 %v76_v17, %v74_v18  ;;  %v78_v21 = vadd.f32 %v76_v17, %v75_v19 }
  0x2e   :  { %v79_v22 = vmul.f32 1.442695, %v77_v20  ;;  %v81_v23 = vmul.f32 1.442695, %v78_v21  ;;  %v119_v24 = vsub.f32 0.0, %v77_v20  ;;  %v120_v25 = vsub.f32 0.0, %v78_v21 }
  0x30   :  { %184 = vpow2.f32 %v79_v22  ;;  %v121_v26 = vmul.f32 1.442695, %v119_v24  ;;  %v123_v27 = vmul.f32 1.442695, %v120_v25 }
  0x31   :  { %186 = vpow2.f32 %v81_v23 }
  0x32   :  { %188 = vpow2.f32 %v121_v26 }
  0x33   :  { %190 = vpow2.f32 %v123_v27 }
  0x3d   :  { %v185_v28 = vpop.eup %184 }
  0x3e   :  { %v187_v29 = vpop.eup %186  ;;  %v83_v30 = vadd.f32 1.0, %v185_v28 }
  0x3f   :  { %v189_v31 = vpop.eup %188  ;;  %v84_v32 = vadd.f32 1.0, %v187_v29 }
  0x40   :  { %v191_v33 = vpop.eup %190  ;;  %192 = vrcp.f32 %v83_v30  ;;  %v125_v34 = vadd.f32 1.0, %v189_v31 }
  0x41   :  { %194 = vrcp.f32 %v84_v32  ;;  %v126_v35 = vadd.f32 1.0, %v191_v33 }
  0x42   :  { %196 = vrcp.f32 %v125_v34 }
  0x43   :  { %198 = vrcp.f32 %v126_v35 }
  0x4d   :  { %v193_v42 = vpop.eup %192 }
  0x4e   :  { %v195_v43 = vpop.eup %194  ;;  %v97_v44 = vrot.slane %v193_v42, %v96_v41 }
  0x4f   :  { %v197_v45 = vpop.eup %196  ;;  %v104_v46 = vrot.slane %v195_v43, %v96_v41 }
  0x50   :  { %v199_v47 = vpop.eup %198  ;;  %v139_v48 = vrot.slane %v197_v45, %v96_v41 }
  0x51   :  { %v105_v49 = vcombine.low %v97_v44, %v104_v46  ;;  %v146_v50 = vrot.slane %v199_v47, %v96_v41 }
  0x53   :  { %v112_v51 = vrot.slane %v105_v49, %v96_v41  ;;  %v147_v52 = vcombine.low %v139_v48, %v146_v50 }
  0x55   :  { %118 = vst.msk [vmem:[#allocation8] ss:$2 sm:$0xf] %vm116_vm0, %v112_v51  ;;  %v154_v53 = vrot.slane %v147_v52, %v96_v41 }
  0x57   :  { %157 = vst.msk [vmem:[#allocation8 + $0x1] ss:$2 sm:$0xf] %vm116_vm0, %v154_v53 }
  0x58   :  { %243 = shalt.err (!%p240_p0)
}
  0x59   :  { %167 = dma.vmem_to_hbm [thread:$0]  %s165_s25, 128, %s297_s3, [#allocation5]  }
  0x5a   :  { %256 = dma.done.wait [#allocation5], 128  }
  0x5b   :  { %257 = vsyncadd [#allocation5], 4294967168 }
  0x5c   :  { %171 = vsyncpa [#allocation4], 1 }
  0x5d   :  { %172 = vsyncpa [#allocation5], 1 }
  0x5e   :  { %173 = vsyncpa [#allocation6], 1 }

</bundles_post_ra>
